<compile_context>
chip_gen: v7x
topology: tpu7x:2x2x1
jax: 0.10.0
libtpu: 0.0.40
codegen_flags: <defaults>
</compile_context>

<pallas_src>
import jax
import jax.numpy as jnp
from jax.experimental import pallas as pl
from jax.experimental.pallas import tpu as pltpu

LANE = 128


# ---------------------------------------------------------------------------
# Kernel
# ---------------------------------------------------------------------------
def mlp_kernel(x_ref, w1_ref, b1_ref, w2_ref, b2_ref, w3_ref, b3_ref, o_ref):
    """Fused 3-layer MLP on the MXU: relu(relu(x@W1+b1)@W2+b2)@W3+b3."""
    cdt = w1_ref.dtype                      # MXU operand dtype (bf16 or f32)
    x = x_ref[...]
    h = jnp.dot(x, w1_ref[...], preferred_element_type=jnp.float32)
    h = jnp.maximum(h + b1_ref[...], 0.0)
    h = jnp.dot(h.astype(cdt), w2_ref[...], preferred_element_type=jnp.float32)
    h = jnp.maximum(h + b2_ref[...], 0.0)
    y = jnp.dot(h.astype(cdt), w3_ref[...], preferred_element_type=jnp.float32)
    o_ref[...] = (y + b3_ref[...]).astype(o_ref.dtype)


# ---------------------------------------------------------------------------
# Helpers
# ---------------------------------------------------------------------------
def _round_up(a, b):
    return (a + b - 1) // b * b


def _pad2(a, rows, cols):
    r, c = a.shape
    if r == rows and c == cols:
        return a
    return jnp.pad(a, ((0, rows - r), (0, cols - c)))


def _tpu_defaults():
    """(default_tm, vmem_capacity_bytes, is_v5e) chosen per TPU generation."""
    kind = ""
    try:
        kind = jax.devices()[0].device_kind.lower()
    except Exception:
        pass
    try:
        vmem_cap = int(pltpu.get_tpu_info().vmem_capacity_bytes)
    except Exception:
        vmem_cap = 64 * 1024 * 1024  # conservative (v7x-sized) fallback
    is_v5e = ("v5e" in kind) or ("v5 lite" in kind) or ("v5litepod" in kind)
    if is_v5e:
        tm = 128          # 4x128^2 MXU: M=128 already fills it; saves VMEM
    elif "v6" in kind:
        tm = 512          # 128 MiB VMEM, 256-wide MXU: big panels amortize overhead
    else:
        tm = 256          # v7x / unknown
    return tm, vmem_cap, is_v5e


_SINGLE_BUFFER_OK = None


def _single_buffer_supported():
    """One-time probe (cached) of pipeline_mode=pl.Buffered(1) lowering support."""
    global _SINGLE_BUFFER_OK
    if _SINGLE_BUFFER_OK is not None:
        return _SINGLE_BUFFER_OK

    def k(w_ref, o_ref):
        o_ref[...] = w_ref[...] * 2.0

    try:
        w = jnp.ones((8, LANE), jnp.float32)
        out = pl.pallas_call(
            k,
            out_shape=jax.ShapeDtypeStruct((8, LANE), jnp.float32),
            grid=(2,),
            in_specs=[pl.BlockSpec((8, LANE), lambda i: (0, 0),
                                   pipeline_mode=pl.Buffered(1))],
            out_specs=pl.BlockSpec((8, LANE), lambda i: (0, 0)),
        )(w)
        jax.block_until_ready(out)
        _SINGLE_BUFFER_OK = True
    except Exception:
        _SINGLE_BUFFER_OK = False
    return _SINGLE_BUFFER_OK


# ---------------------------------------------------------------------------
# Module-like wrapper: pad/cast weights once, jitted per-call apply
# ---------------------------------------------------------------------------
class PallasMLP:
    """Fused-MLP forward. Weight padding/casting happens once at construction."""

    def __init__(self, params, *, compute_dtype=jnp.bfloat16, tm=None):
        tm_default, vmem_cap, is_v5e = _tpu_defaults()
        self.tm = int(tm) if tm is not None else tm_default
        self.vmem_budget = int(0.8 * vmem_cap)       # 20% headroom for Mosaic scratch
        self.is_v5e = is_v5e
        self.cdt = jnp.dtype(compute_dtype)
        self.single = _single_buffer_supported()     # probed once, cached

        w1, b1, w2, b2, w3, b3 = (params[k] for k in ("w1", "b1", "w2", "b2", "w3", "b3"))
        self.inp_dim = int(w1.shape[0])
        self.hidden = int(w1.shape[1])
        self.out_dim = int(w3.shape[1])
        self.inp_p = _round_up(self.inp_dim, LANE)
        self.hid_p = _round_up(self.hidden, LANE)
        self.out_p = _round_up(self.out_dim, LANE)

        # One-time pad + cast (hoisted out of the per-call path).
        self.w1p = _pad2(w1, self.inp_p, self.hid_p).astype(self.cdt)
        self.w2p = _pad2(w2, self.hid_p, self.hid_p).astype(self.cdt)
        self.w3p = _pad2(w3, self.hid_p, self.out_p).astype(self.cdt)
        self.b1p = _pad2(b1, 1, self.hid_p).astype(jnp.float32)
        self.b2p = _pad2(b2, 1, self.hid_p).astype(jnp.float32)
        self.b3p = _pad2(b3, 1, self.out_p).astype(jnp.float32)

        w_itemsize = self.cdt.itemsize
        self.weight_bytes = (self.w1p.size + self.w2p.size + self.w3p.size) * w_itemsize \
            + (self.b1p.size + self.b2p.size + self.b3p.size) * 4

        if self.weight_bytes > int(0.6 * vmem_cap):
            # TODO(synk): stream hidden-dim weight tiles (2nd 'arbitrary' grid axis
            # + f32 VMEM accumulator) instead of requiring fully-resident weights.
            raise ValueError(
                f"MLP weights ({self.weight_bytes / 2**20:.1f} MiB in {self.cdt}) exceed the "
                f"resident-weight budget for this TPU ({0.6 * vmem_cap / 2**20:.0f} MiB); "
                "use a narrower compute_dtype or add hidden-dim tiling.")

        self._apply = jax.jit(self._pallas_forward)

    # -- per-call path (jitted; no host sync, no try/except) ----------------
    def _pallas_forward(self, x, w1p, b1p, w2p, b2p, w3p, b3p):
        N = x.shape[0]
        out_dtype = x.dtype
        cdt = self.cdt
        w_itemsize = cdt.itemsize
        pack = 32 // w_itemsize                 # sublane packing: 8 f32, 16 bf16, 32 i8/fp8
        inp_p, hid_p, out_p = self.inp_p, self.hid_p, self.out_p

        # Row tile: as large as requested, rounded to the dtype packing.
        tm_eff = min(self.tm, _round_up(N, pack))
        # Guarantee >=2 grid steps (keeps both v7x TensorCores busy and enables
        # DMA/compute pipelining) whenever the split still gives >=128-row panels.
        if _round_up(N, tm_eff) // tm_eff < 2 and tm_eff >= 2 * LANE:
            tm_eff = max(LANE, _round_up((N + 1) // 2, pack))
        Np = _round_up(N, tm_eff)
        grid = (Np // tm_eff,)

        xp = _pad2(x, Np, inp_p).astype(cdt)

        io_bytes = xp.size * w_itemsize + Np * out_p * jnp.dtype(out_dtype).itemsize
        cost = pl.CostEstimate(
            flops=2 * Np * (inp_p * hid_p + hid_p * hid_p + hid_p * out_p),
            transcendentals=0,
            bytes_accessed=self.weight_bytes + io_bytes,
        )

        # VMEM budget: resident weights (x2 if single-buffering unavailable),
        # double-buffered x/out tiles, f32 activation temporaries; per-generation
        # cap with headroom already applied in self.vmem_budget.
        wbuf = 1 if self.single else 2
        tile_bytes = 2 * tm_eff * (inp_p * w_itemsize
                                   + out_p * jnp.dtype(out_dtype).itemsize)
        act_bytes = 2 * tm_eff * hid_p * 4
        vmem_limit = min(self.vmem_budget,
                         max(32 * 1024 * 1024,
                             int(1.25 * (wbuf * self.weight_bytes + tile_bytes + act_bytes))))

        def wspec(shape):
            # Weight/bias blocks are grid-invariant -> single buffer if supported.
            if self.single:
                return pl.BlockSpec(shape, lambda i: (0, 0),
                                    pipeline_mode=pl.Buffered(1))
            return pl.BlockSpec(shape, lambda i: (0, 0))

        # On v5e's lower HBM BW with small hidden, a third x buffer hides the
        # exposed tile DMA; neutral elsewhere.
        if self.single and self.is_v5e and hid_p <= 512:
            x_spec = pl.BlockSpec((tm_eff, inp_p), lambda i: (i, 0),
                                  pipeline_mode=pl.Buffered(3))
        else:
            x_spec = pl.BlockSpec((tm_eff, inp_p), lambda i: (i, 0))

        out = pl.pallas_call(
            mlp_kernel,
            out_shape=jax.ShapeDtypeStruct((Np, out_p), out_dtype),
            grid_spec=pltpu.PrefetchScalarGridSpec(
                num_scalar_prefetch=0,
                grid=grid,
                in_specs=[
                    x_spec,                      # x rows
                    wspec((inp_p, hid_p)),       # w1
                    wspec((1, hid_p)),           # b1
                    wspec((hid_p, hid_p)),       # w2
                    wspec((1, hid_p)),           # b2
                    wspec((hid_p, out_p)),       # w3
                    wspec((1, out_p)),           # b3
                ],
                out_specs=pl.BlockSpec((tm_eff, out_p), lambda i: (i, 0)),
            ),
            compiler_params=pltpu.CompilerParams(
                dimension_semantics=("parallel",),   # batch tiles shard across TCs
                vmem_limit_bytes=vmem_limit,
            ),
            cost_estimate=cost,
        )(xp, w1p, b1p, w2p, b2p, w3p, b3p)

        return out[:N, :self.out_dim]

    def __call__(self, x):
        return self._apply(x, self.w1p, self.b1p, self.w2p, self.b2p, self.w3p, self.b3p)


def mlp_pallas(x, params, *, compute_dtype=jnp.bfloat16, tm=None):
    """Convenience one-shot wrapper (prefer constructing PallasMLP once)."""
    return PallasMLP(params, compute_dtype=compute_dtype, tm=tm)(x)


# ---------------------------------------------------------------------------
# Parameter init mirroring nn.Linear (uniform(-1/sqrt(fan_in), 1/sqrt(fan_in)))
# ---------------------------------------------------------------------------
def init_mlp_params(key, inp_dim, output_dim, hidden_size=None):
    if hidden_size is None:
        hidden_size = inp_dim
    ks = jax.random.split(key, 6)

    def lin(kw, kb, fan_in, fan_out):
        bound = 1.0 / (fan_in ** 0.5)
        w = jax.random.uniform(kw, (fan_in, fan_out), jnp.float32, -bound, bound)
        b = jax.random.uniform(kb, (1, fan_out), jnp.float32, -bound, bound)
        return w, b

    w1, b1 = lin(ks[0], ks[1], inp_dim, hidden_size)
    w2, b2 = lin(ks[2], ks[3], hidden_size, hidden_size)
    w3, b3 = lin(ks[4], ks[5], hidden_size, output_dim)
    return {"w1": w1, "b1": b1, "w2": w2, "b2": b2, "w3": w3, "b3": b3}


def mlp_ref(x, p):
    h = jnp.maximum(x @ p["w1"] + p["b1"], 0.0)
    h = jnp.maximum(h @ p["w2"] + p["b2"], 0.0)
    return h @ p["w3"] + p["b3"]


if __name__ == "__main__":
    key = jax.random.PRNGKey(0)
    kx, kp = jax.random.split(key)

    N, inp_dim, hidden, out_dim = 16, 32, 32, 16
    x = jax.random.normal(kx, (N, inp_dim), jnp.float32)
    params = init_mlp_params(kp, inp_dim, out_dim, hidden)

    ref = mlp_ref(x, params)

    # Exact f32 MXU operands: must match the reference tightly.
    mlp_f32 = PallasMLP(params, compute_dtype=jnp.float32)
    out_f32 = jax.block_until_ready(mlp_f32(x))
    assert out_f32.shape == (N, out_dim)
    assert jnp.allclose(out_f32, ref, atol=1e-5, rtol=1e-5), "f32 mismatch vs JAX reference"

    # Default fast path: bf16 MXU operands, f32 accumulation (looser tolerance,
    # operand-quantization-level error).
    mlp_fast = PallasMLP(params)
    out_bf16 = jax.block_until_ready(mlp_fast(x))
    assert out_bf16.shape == (N, out_dim)
    assert jnp.allclose(out_bf16, ref, atol=1e-1, rtol=1e-1), "bf16 mismatch vs JAX reference"

    print("KERNEL_OK")
</pallas_src>

<mosaic_0001>
module attributes {stable_mosaic.version = 11 : i64} {
  func.func @k(%arg0: i32, %arg1: memref<8x128xf32, #tpu.memory_space<vmem>>, %arg2: memref<8x128xf32, #tpu.memory_space<vmem>>) attributes {dimension_semantics = [#tpu.dimension_semantics<arbitrary>], iteration_bounds = array<i64: 2>, scalar_prefetch = 0 : i64, scratch_operands = 0 : i64, tpu.core_type = #tpu.core_type<tc>, window_params = [{pipeline_mode = #tpu.pipeline_mode<synchronous>, transform_indices = @transform_0, window_bounds = array<i64: 8, 128>}, {pipeline_mode = #tpu.pipeline_mode<synchronous>, transform_indices = @transform_1, window_bounds = array<i64: 8, 128>}]} {
    %c0 = arith.constant 0 : index
    %c0_0 = arith.constant 0 : index
    %0 = vector.load %arg1[%c0, %c0_0] : memref<8x128xf32, #tpu.memory_space<vmem>>, vector<8x128xf32>
    %cst = arith.constant 2.000000e+00 : f32
    %1 = vector.broadcast %cst : f32 to vector<8x128xf32>
    %2 = arith.mulf %0, %1 : vector<8x128xf32>
    %c0_1 = arith.constant 0 : index
    %c0_2 = arith.constant 0 : index
    %3 = vector.load %arg2[%c0_1, %c0_2] : memref<8x128xf32, #tpu.memory_space<vmem>>, vector<8x128xf32>
    tpu.vector_store %arg2[%c0_1, %c0_2], %2 {strides = array<i32>} : memref<8x128xf32, #tpu.memory_space<vmem>>, vector<8x128xf32>,
    return
  }
  func.func @transform_0(%arg0: i32) -> (i32, i32) {
    %c0_i32 = arith.constant 0 : i32
    %c0_i32_0 = arith.constant 0 : i32
    %c0_i32_1 = arith.constant 0 : i32
    return %c0_i32, %c0_i32_0 : i32, i32
  }
  func.func @transform_1(%arg0: i32) -> (i32, i32) {
    %c0_i32 = arith.constant 0 : i32
    %c0_i32_0 = arith.constant 0 : i32
    %c0_i32_1 = arith.constant 0 : i32
    return %c0_i32, %c0_i32_0 : i32, i32
  }
}

module attributes {stable_mosaic.version = 11 : i64} {
  func.func @mlp_kernel(%arg0: i32, %arg1: memref<16x128xf32, #tpu.memory_space<vmem>>, %arg2: memref<128x128xf32, #tpu.memory_space<vmem>>, %arg3: memref<1x128xf32, #tpu.memory_space<vmem>>, %arg4: memref<128x128xf32, #tpu.memory_space<vmem>>, %arg5: memref<1x128xf32, #tpu.memory_space<vmem>>, %arg6: memref<128x128xf32, #tpu.memory_space<vmem>>, %arg7: memref<1x128xf32, #tpu.memory_space<vmem>>, %arg8: memref<16x128xf32, #tpu.memory_space<vmem>>) attributes {dimension_semantics = [#tpu.dimension_semantics<parallel>], iteration_bounds = array<i64: 1>, scalar_prefetch = 0 : i64, scratch_operands = 0 : i64, tpu.core_type = #tpu.core_type<tc>, window_params = [{transform_indices = @transform_0, window_bounds = array<i64: 16, 128>}, {pipeline_mode = #tpu.pipeline_mode<synchronous>, transform_indices = @transform_1, window_bounds = array<i64: 128, 128>}, {pipeline_mode = #tpu.pipeline_mode<synchronous>, transform_indices = @transform_2, window_bounds = array<i64: 1, 128>}, {pipeline_mode = #tpu.pipeline_mode<synchronous>, transform_indices = @transform_3, window_bounds = array<i64: 128, 128>}, {pipeline_mode = #tpu.pipeline_mode<synchronous>, transform_indices = @transform_4, window_bounds = array<i64: 1, 128>}, {pipeline_mode = #tpu.pipeline_mode<synchronous>, transform_indices = @transform_5, window_bounds = array<i64: 128, 128>}, {pipeline_mode = #tpu.pipeline_mode<synchronous>, transform_indices = @transform_6, window_bounds = array<i64: 1, 128>}, {transform_indices = @transform_7, window_bounds = array<i64: 16, 128>}]} {
    %c0 = arith.constant 0 : index
    %c0_0 = arith.constant 0 : index
    %0 = vector.load %arg1[%c0, %c0_0] : memref<16x128xf32, #tpu.memory_space<vmem>>, vector<16x128xf32>
    %c0_1 = arith.constant 0 : index
    %c0_2 = arith.constant 0 : index
    %1 = vector.load %arg2[%c0_1, %c0_2] : memref<128x128xf32, #tpu.memory_space<vmem>>, vector<128x128xf32>
    %cst = arith.constant dense<0.000000e+00> : vector<16x128xf32>
    %2 = tpu.matmul %0, %1, %cst {dimension_numbers = #tpu.dot_dimension_numbers<[1], [0], [0], [1], [0, 0, 1, 1], [], []>} : vector<16x128xf32>, vector<128x128xf32>, vector<16x128xf32> -> vector<16x128xf32>
    %c0_3 = arith.constant 0 : index
    %c0_4 = arith.constant 0 : index
    %3 = vector.load %arg3[%c0_3, %c0_4] : memref<1x128xf32, #tpu.memory_space<vmem>>, vector<1x128xf32>
    %4 = vector.broadcast %3 : vector<1x128xf32> to vector<16x128xf32>
    %5 = arith.addf %2, %4 : vector<16x128xf32>
    %cst_5 = arith.constant 0.000000e+00 : f32
    %6 = vector.broadcast %cst_5 : f32 to vector<16x128xf32>
    %7 = arith.maximumf %5, %6 : vector<16x128xf32>
    %c0_6 = arith.constant 0 : index
    %c0_7 = arith.constant 0 : index
    %8 = vector.load %arg4[%c0_6, %c0_7] : memref<128x128xf32, #tpu.memory_space<vmem>>, vector<128x128xf32>
    %cst_8 = arith.constant dense<0.000000e+00> : vector<16x128xf32>
    %9 = tpu.matmul %7, %8, %cst_8 {dimension_numbers = #tpu.dot_dimension_numbers<[1], [0], [0], [1], [0, 0, 1, 1], [], []>} : vector<16x128xf32>, vector<128x128xf32>, vector<16x128xf32> -> vector<16x128xf32>
    %c0_9 = arith.constant 0 : index
    %c0_10 = arith.constant 0 : index
    %10 = vector.load %arg5[%c0_9, %c0_10] : memref<1x128xf32, #tpu.memory_space<vmem>>, vector<1x128xf32>
    %11 = vector.broadcast %10 : vector<1x128xf32> to vector<16x128xf32>
    %12 = arith.addf %9, %11 : vector<16x128xf32>
    %cst_11 = arith.constant 0.000000e+00 : f32
    %13 = vector.broadcast %cst_11 : f32 to vector<16x128xf32>
    %14 = arith.maximumf %12, %13 : vector<16x128xf32>
    %c0_12 = arith.constant 0 : index
    %c0_13 = arith.constant 0 : index
    %15 = vector.load %arg6[%c0_12, %c0_13] : memref<128x128xf32, #tpu.memory_space<vmem>>, vector<128x128xf32>
    %cst_14 = arith.constant dense<0.000000e+00> : vector<16x128xf32>
    %16 = tpu.matmul %14, %15, %cst_14 {dimension_numbers = #tpu.dot_dimension_numbers<[1], [0], [0], [1], [0, 0, 1, 1], [], []>} : vector<16x128xf32>, vector<128x128xf32>, vector<16x128xf32> -> vector<16x128xf32>
    %c0_15 = arith.constant 0 : index
    %c0_16 = arith.constant 0 : index
    %17 = vector.load %arg7[%c0_15, %c0_16] : memref<1x128xf32, #tpu.memory_space<vmem>>, vector<1x128xf32>
    %18 = vector.broadcast %17 : vector<1x128xf32> to vector<16x128xf32>
    %19 = arith.addf %16, %18 : vector<16x128xf32>
    %c0_17 = arith.constant 0 : index
    %c0_18 = arith.constant 0 : index
    %20 = vector.load %arg8[%c0_17, %c0_18] : memref<16x128xf32, #tpu.memory_space<vmem>>, vector<16x128xf32>
    tpu.vector_store %arg8[%c0_17, %c0_18], %19 {strides = array<i32>} : memref<16x128xf32, #tpu.memory_space<vmem>>, vector<16x128xf32>,
    return
  }
  func.func @transform_0(%arg0: i32) -> (i32, i32) {
    %c0_i32 = arith.constant 0 : i32
    %c0_i32_0 = arith.constant 0 : i32
    return %arg0, %c0_i32 : i32, i32
  }
  func.func @transform_1(%arg0: i32) -> (i32, i32) {
    %c0_i32 = arith.constant 0 : i32
    %c0_i32_0 = arith.constant 0 : i32
    %c0_i32_1 = arith.constant 0 : i32
    return %c0_i32, %c0_i32_0 : i32, i32
  }
  func.func @transform_2(%arg0: i32) -> (i32, i32) {
    %c0_i32 = arith.constant 0 : i32
    %c0_i32_0 = arith.constant 0 : i32
    %c0_i32_1 = arith.constant 0 : i32
    return %c0_i32, %c0_i32_0 : i32, i32
  }
  func.func @transform_3(%arg0: i32) -> (i32, i32) {
    %c0_i32 = arith.constant 0 : i32
    %c0_i32_0 = arith.constant 0 : i32
    %c0_i32_1 = arith.constant 0 : i32
    return %c0_i32, %c0_i32_0 : i32, i32
  }
  func.func @transform_4(%arg0: i32) -> (i32, i32) {
    %c0_i32 = arith.constant 0 : i32
    %c0_i32_0 = arith.constant 0 : i32
    %c0_i32_1 = arith.constant 0 : i32
    return %c0_i32, %c0_i32_0 : i32, i32
  }
  func.func @transform_5(%arg0: i32) -> (i32, i32) {
    %c0_i32 = arith.constant 0 : i32
    %c0_i32_0 = arith.constant 0 : i32
    %c0_i32_1 = arith.constant 0 : i32
    return %c0_i32, %c0_i32_0 : i32, i32
  }
  func.func @transform_6(%arg0: i32) -> (i32, i32) {
    %c0_i32 = arith.constant 0 : i32
    %c0_i32_0 = arith.constant 0 : i32
    %c0_i32_1 = arith.constant 0 : i32
    return %c0_i32, %c0_i32_0 : i32, i32
  }
  func.func @transform_7(%arg0: i32) -> (i32, i32) {
    %c0_i32 = arith.constant 0 : i32
    %c0_i32_0 = arith.constant 0 : i32
    return %arg0, %c0_i32 : i32, i32
  }
}

</mosaic_0001>

<bundles_post_ra>
// kernel: tpu_custom_call.1
= control target key start
LH: loop header
LB: loop body
LE: loop exit
PB: predicated region body
PF: predicated region fallthrough
CT: control target
= control target key end

     0   :  { %6 = vsyncpa [#allocation3], 0  ;;  %s341_s0 = inlined_call_operand.hbm [shape: f32[8,128], index: 0, kind: input, shape index: {}]   ;;  %s342_s1 = inlined_call_operand.hbm [shape: f32[8,128], index: 1, kind: output, shape index: {}]  }
   0x1   :  { %7 = vsyncpa [#allocation4], 0  ;;  %s262_s6 = smov 0  }
   0x2 LB: > { %s145_s7 = sadd.s32 4294967295, %s248_s6   ;;  %p146_p0 = scmp.ge.s32.totalorder %s248_s6, 1  ;;  %s248_s6 = sphi %s262_s6, %s13_s6  }
   0x3   : > { %p60_p1 = scmp.lt.s32.totalorder %s248_s6, 3  ;;  %p276_p3 = scmp.eq.s32.totalorder %s145_s7, 0 }
   0x4   : > { %s250_s10 = smov [#allocation2]   ;;  %s180_s15 = scalar_lea.hbm %s341_s0, 128 }
   0x5   : > { %p270_p2 = pnand %p146_p0, %p60_p1  ;;  %s73_s11 = sshll.u32 %s250_s10, 4  ;;  %s74_s11 = int_to_ptr.vmem [resolvable:$true] %s73_s11 }
   0x6   : > { %s347_s9 = scalar_select %p276_p3, 1, 0 }
   0x7   : > { %s346_s8 = scalar_select %p270_p2, 1, 0 }
   0x8   : > { %p162_p4 = pneg %p270_p2  ;;  %p181_p6 = scmp.ne.s32.totalorder %s341_s0, %s180_s15 }
   0x9   : > { %p187_p10 = scmp.lt.u32.totalorder %s180_s15, %s341_s0 }
   0xa   : > { %p284_p5 = pnand %p276_p3, %p162_p4 }
   0xc   : > { %p182_p7 = pneg %p284_p5 }
   0xe   : > { %p183_p8 = pnand %p182_p7, %p181_p6 }
  0x10   : > { %p184_p9 = pneg %p183_p8 }
  0x12   : > { %p189_p11 = pnand %p187_p10, %p184_p9 }
  0x14   : > { %192 = shalt.err (!%p189_p11)
}
  0x15   : > { %s193_s20 = scalar_lea.vmem %s74_s11, 128  ;;  %p201_p1 = scmp.lt.s32.totalorder %s74_s11, %s74_s11 }
  0x16   : > { %p194_p12 = scmp.ne.s32.totalorder %s74_s11, %s193_s20  ;;  %p202_p4 = scmp.lt.s32.totalorder %s193_s20, %s193_s20 }
  0x18   : > { %p196_p13 = pnand %p194_p12, %p182_p7  ;;  %p203_p3 = por %p202_p4, %p201_p1 }
  0x1a   : > { %p197_p0 = pneg %p196_p13 }
  0x1c   : > { %p204_p2 = pnand %p203_p3, %p197_p0 }
  0x1e   : > { %207 = shalt.err (!%p204_p2)
}
  0x1f   : > { %165 = dma.hbm_to_vmem [thread:$0]  (!%p284_p5), %s341_s0, 128, %s74_s11, [#allocation3]  }
  0x20   : > { %p349_p6 = scmp.ne.s32.totalorder %s346_s8, 0 }
  0x21   : > { %p350_p8 = scmp.ne.s32.totalorder (!%p349_p6), %s347_s9, 0 }
  0x22   : > { %86 = sbr.rel (%p349_p6) target bundleno = 67 (0x43), region = 24 }
  0x29   : > { %239 = dma.done.wait (%p350_p8), [#allocation3], 128  }
  0x2a   : > { %241 = vsyncadd (%p350_p8), [#allocation3], 4294967168  ;;  %s251_s23 = smov [#allocation5]   ;;  %v96_v0 = vld [vmem:[#allocation2] sm:$0xff]  ;;  %p312_p2 = scmp.eq.s32.totalorder %s145_s7, 1 }
  0x2b   : > { %s106_s24 = sshll.u32 %s251_s23, 4  ;;  %v97_v1 = vmul.f32 2.0, %v96_v0  ;;  %s107_s24 = int_to_ptr.vmem [resolvable:$true] %s106_s24 }
  0x2c   : > { %s208_s26 = scalar_lea.vmem %s107_s24, 128  ;;  %p215_p9 = scmp.lt.s32.totalorder %s107_s24, %s107_s24 }
  0x2d   : > { %98 = vst [vmem:[#allocation5] sm:$0xff] %v97_v1  ;;  %p209_p3 = scmp.ne.s32.totalorder %s107_s24, %s208_s26  ;;  %p216_p10 = scmp.lt.s32.totalorder %s208_s26, %s208_s26 }
  0x2f   : > { %p210_p5 = pnand %p209_p3, %p312_p2  ;;  %p217_p11 = por %p216_p10, %p215_p9 }
  0x31   : > { %p211_p7 = pneg %p210_p5 }
  0x33   : > { %p218_p12 = pnand %p217_p11, %p211_p7 }
  0x35   : > { %221 = shalt.err (!%p218_p12)
}
  0x36   : > { %s222_s29 = scalar_lea.hbm %s342_s1, 128 }
  0x37   : > { %p223_p13 = scmp.ne.s32.totalorder %s342_s1, %s222_s29  ;;  %p228_p4 = scmp.lt.u32.totalorder %s222_s29, %s342_s1 }
  0x39   : > { %p224_p0 = pnand %p223_p13, %p312_p2 }
  0x3b   : > { %p225_p1 = pneg %p224_p0 }
  0x3d   : > { %p230_p6 = pnand %p228_p4, %p225_p1 }
  0x3f   : > { %233 = shalt.err (!%p230_p6)
}
  0x40   : > { %159 = dma.vmem_to_hbm [thread:$0]  (%p312_p2), %s107_s24, 128, %s342_s1, [#allocation4]  }
  0x41   : > { %243 = dma.done.wait (%p312_p2), [#allocation4], 128  }
  0x42   : > { %245 = vsyncadd (%p312_p2), [#allocation4], 4294967168 }
  0x43 PF: > { %s13_s6 = sadd.s32 1, %s248_s6  }
  0x44   : > { %p10_p8 = scmp.ge.s32.totalorder %s13_s6, 4  }
  0x46   :  { %12 = sbr.rel (!%p10_p8) target bundleno = 2 (0x2), region = 53 }
  0x4d   :  { %119 = vsyncpa [#allocation3], 1 }
  0x4e   :  { %121 = vsyncpa [#allocation3 + $0x1], 1 }
  0x4f   :  { %122 = vsyncpa [#allocation4], 1 }
  0x50   :  { %124 = vsyncpa [#allocation4 + $0x1], 1 }

// kernel: _pallas_forward.1
= control target key start
LH: loop header
LB: loop body
LE: loop exit
PB: predicated region body
PF: predicated region fallthrough
CT: control target
= control target key end

     0   :  { %12 = vsyncpa [#allocation3], 0  ;;  %s874_s0 = inlined_call_operand.vmem [shape: f32[16,128], index: 0, kind: input, shape index: {}]   ;;  %s875_s1 = inlined_call_operand.hbm [shape: f32[128,128], index: 1, kind: input, shape index: {}]   ;;  %s876_s2 = inlined_call_operand.vmem [shape: f32[1,128], index: 2, kind: input, shape index: {}]   ;;  %s877_s3 = inlined_call_operand.hbm [shape: f32[128,128], index: 3, kind: input, shape index: {}]   ;;  %s878_s4 = inlined_call_operand.vmem [shape: f32[1,128], index: 4, kind: input, shape index: {}]   ;;  %s879_s5 = inlined_call_operand.hbm [shape: f32[128,128], index: 5, kind: input, shape index: {}]   ;;  %s880_s6 = inlined_call_operand.vmem [shape: f32[1,128], index: 6, kind: input, shape index: {}]   ;;  %s881_s7 = inlined_call_operand.hbm [shape: f32[16,128], index: 7, kind: output, shape index: {}]  }
   0x1   :  { %13 = vsyncpa [#allocation6], 0 }
   0x2   :  { %14 = vsyncpa [#allocation4], 0  ;;  %s746_s24 = smov [#allocation5]   ;;  %s747_s26 = smov [#allocation2]  }
   0x3   :  { %s36_s25 = sshll.u32 %s746_s24, 4  ;;  %s22_s27 = sshll.u32 %s747_s26, 4  ;;  %s37_s25 = int_to_ptr.vmem [resolvable:$true] %s36_s25  ;;  %s792_s27 = int_to_ptr.vmem [resolvable:$true] %s22_s27 }
   0x4   :  { %s652_s30 = scalar_lea.hbm %s877_s3, 2048 }
   0x5   :  { %p653_p0 = scmp.ne.s32.totalorder %s877_s3, %s652_s30  ;;  %p656_p1 = scmp.lt.u32.totalorder %s652_s30, %s877_s3 }
   0x7   :  { %p658_p2 = pnand %p656_p1, %p653_p0 }
   0x9   :  { %661 = shalt.err (!%p658_p2)
}
   0xa   :  { %s662_s12 = scalar_lea.vmem %s37_s25, 2048  ;;  %p667_p4 = scmp.lt.s32.totalorder %s37_s25, %s37_s25 }
   0xb   :  { %p663_p3 = scmp.ne.s32.totalorder %s37_s25, %s662_s12  ;;  %p668_p5 = scmp.lt.s32.totalorder %s662_s12, %s662_s12 }
   0xd   :  { %p669_p6 = por %p668_p5, %p667_p4 }
   0xf   :  { %p670_p7 = pnand %p669_p6, %p663_p3 }
  0x11   :  { %673 = shalt.err (!%p670_p7)
}
  0x12   :  { %s748_s13 = smov 128   ;;  %s749_s14 = smov 8  }
  0x13   :  { %42 = dma.hbm_to_vmem [thread:$0]  %s877_s3, 2048, %s37_s25, [#allocation6], %s748_s13, %s748_s13, %s749_s14  }
  0x14   :  { %s674_s19 = scalar_lea.hbm %s875_s1, 2048 }
  0x15   :  { %p675_p8 = scmp.ne.s32.totalorder %s875_s1, %s674_s19  ;;  %p678_p9 = scmp.lt.u32.totalorder %s674_s19, %s875_s1 }
  0x17   :  { %p680_p10 = pnand %p678_p9, %p675_p8 }
  0x19   :  { %683 = shalt.err (!%p680_p10)
}
  0x1a   :  { %s684_s24 = scalar_lea.vmem %s792_s27, 2048  ;;  %p689_p12 = scmp.lt.s32.totalorder %s792_s27, %s792_s27 }
  0x1b   :  { %p685_p11 = scmp.ne.s32.totalorder %s792_s27, %s684_s24  ;;  %p690_p13 = scmp.lt.s32.totalorder %s684_s24, %s684_s24 }
  0x1d   :  { %p691_p0 = por %p690_p13, %p689_p12 }
  0x1f   :  { %p692_p1 = pnand %p691_p0, %p685_p11 }
  0x21   :  { %695 = shalt.err (!%p692_p1)
}
  0x22   :  { %28 = dma.hbm_to_vmem [thread:$0]  %s875_s1, 2048, %s792_s27, [#allocation3], %s748_s13, %s748_s13, %s749_s14  }
  0x23   :  { %s750_s26 = smov [#allocation7]   ;;  %s696_s8 = scalar_lea.hbm %s879_s5, 2048 }
  0x24   :  { %s50_s28 = sshll.u32 %s750_s26, 4  ;;  %p697_p2 = scmp.ne.s32.totalorder %s879_s5, %s696_s8  ;;  %s51_s28 = int_to_ptr.vmem [resolvable:$true] %s50_s28 }
  0x25   :  { %p700_p3 = scmp.lt.u32.totalorder %s696_s8, %s879_s5 }
  0x27   :  { %p702_p4 = pnand %p700_p3, %p697_p2 }
  0x29   :  { %705 = shalt.err (!%p702_p4)
}
  0x2a   :  { %s706_s15 = scalar_lea.vmem %s51_s28, 2048  ;;  %p711_p6 = scmp.lt.s32.totalorder %s51_s28, %s51_s28 }
  0x2b   :  { %p707_p5 = scmp.ne.s32.totalorder %s51_s28, %s706_s15  ;;  %p712_p7 = scmp.lt.s32.totalorder %s706_s15, %s706_s15 }
  0x2d   :  { %p713_p8 = por %p712_p7, %p711_p6 }
  0x2f   :  { %p714_p9 = pnand %p713_p8, %p707_p5 }
  0x31   :  { %717 = shalt.err (!%p714_p9)
}
  0x32   :  { %56 = dma.hbm_to_vmem [thread:$0]  %s879_s5, 2048, %s51_s28, [#allocation6], %s748_s13, %s748_s13, %s749_s14  }
  0x33   :  { %740 = dma.done.wait [#allocation3], 2048  }
  0x34   :  { %741 = vsyncadd [#allocation3], 4294965248 }
  0x35   :  { %742 = dma.done.wait [#allocation6], 4096  }
  0x36   :  { %743 = vsyncadd [#allocation6], 4294963200  ;;  %v70_v0 = vld [vmem:[#allocation2] sm:$0xff]  ;;  %v71_v1 = vld [vmem:[#allocation2 + $0x8] sm:$0xff]  ;;  %s751_s23 = smov [#allocation8]  }
  0x37   :  { %v72_v2 = vld [vmem:[#allocation2 + $0x10] sm:$0xff]  ;;  %v550_v3 = vpack.c.bf16 %v71_v1, %v70_v0  ;;  %v73_v4 = vld [vmem:[#allocation2 + $0x18] sm:$0xff]  ;;  %v74_v6 = vld [vmem:[#allocation2 + $0x20] sm:$0xff]  ;;  %s375_s24 = sshll.u32 %s751_s23, 4  ;;  %s376_s24 = int_to_ptr.vmem [resolvable:$true] %s375_s24 }
  0x38   :  { %v554_v5 = vpack.c.bf16 %v73_v4, %v72_v2  ;;  %v75_v7 = vld [vmem:[#allocation2 + $0x28] sm:$0xff]  ;;  %v76_v9 = vld [vmem:[#allocation2 + $0x30] sm:$0xff]  ;;  %v77_v10 = vld [vmem:[#allocation2 + $0x38] sm:$0xff]  ;;  %p723_p11 = scmp.lt.s32.totalorder %s376_s24, %s376_s24 }
  0x39   :  { %551 = vmatprep.subr.bf16.mxu0 %v550_v3  ;;  %v558_v8 = vpack.c.bf16 %v75_v7, %v74_v6  ;;  %v68_v11 = vld [vmem:[%s874_s0] sm:$0xff]  ;;  %v171_v13 = vld [vmem:[#allocation5 + $0x8] sm:$0xff]  ;;  %v172_v14 = vld [vmem:[#allocation5 + $0x10] sm:$0xff]  ;;  %v562_v20 = vpack.c.bf16 %v77_v10, %v76_v9 }
  0x3a   :  { %553 = vmatpush3.bf16.msra.mxu0 %v550_v3  ;;  %477 = vmatprep.mubr.f32.mxu0 %v68_v11  ;;  %v170_v12 = vld [vmem:[#allocation5] sm:$0xff]  ;;  %v173_v16 = vld [vmem:[#allocation5 + $0x18] sm:$0xff]  ;;  %v175_v19 = vld [vmem:[#allocation5 + $0x28] sm:$0xff] }
  0x3b   :  { %555 = vmatprep.subr.bf16.mxu0 %v554_v5  ;;  %v582_v15 = vpack.c.bf16 %v171_v13, %v170_v12  ;;  %v586_v17 = vpack.c.bf16 %v173_v16, %v172_v14  ;;  %v174_v18 = vld [vmem:[#allocation5 + $0x20] sm:$0xff]  ;;  %v79_v22 = vld [vmem:[#allocation2 + $0x48] sm:$0xff]  ;;  %v176_v24 = vld [vmem:[#allocation5 + $0x30] sm:$0xff] }
  0x3c   :  { %v78_v21 = vld [vmem:[#allocation2 + $0x40] sm:$0xff]  ;;  %v590_v23 = vpack.c.bf16 %v175_v19, %v174_v18  ;;  %v177_v25 = vld [vmem:[#allocation5 + $0x38] sm:$0xff]  ;;  %v80_v27 = vld [vmem:[#allocation2 + $0x50] sm:$0xff] }
  0x3d   :  { %583 = vmatprep.subr.bf16.mxu1 %v582_v15  ;;  %v566_v26 = vpack.c.bf16 %v79_v22, %v78_v21  ;;  %v81_v28 = vld [vmem:[#allocation2 + $0x58] sm:$0xff]  ;;  %v594_v29 = vpack.c.bf16 %v177_v25, %v176_v24  ;;  %v178_v30 = vld [vmem:[#allocation5 + $0x40] sm:$0xff]  ;;  %v179_v31 = vld [vmem:[#allocation5 + $0x48] sm:$0xff] }
  0x3e   :  { %557 = vmatpush3.bf16.msra.mxu0 %v554_v5  ;;  %585 = vmatpush3.bf16.msra.mxu1 %v582_v15  ;;  %v570_v32 = vpack.c.bf16 %v81_v28, %v80_v27  ;;  %v82_v33 = vld [vmem:[#allocation2 + $0x60] sm:$0xff]  ;;  %v83_v34 = vld [vmem:[#allocation2 + $0x68] sm:$0xff]  ;;  %v598_v35 = vpack.c.bf16 %v179_v31, %v178_v30  ;;  %v180_v36 = vld [vmem:[#allocation5 + $0x50] sm:$0xff] }
  0x3f   :  { %559 = vmatprep.subr.bf16.mxu0 %v558_v8  ;;  %587 = vmatprep.subr.bf16.mxu1 %v586_v17  ;;  %v181_v37 = vld [vmem:[#allocation5 + $0x58] sm:$0xff]  ;;  %v574_v38 = vpack.c.bf16 %v83_v34, %v82_v33  ;;  %v84_v39 = vld [vmem:[#allocation2 + $0x70] sm:$0xff]  ;;  %v182_v42 = vld [vmem:[#allocation5 + $0x60] sm:$0xff] }
  0x40   :  { %v85_v40 = vld [vmem:[#allocation2 + $0x78] sm:$0xff]  ;;  %v602_v41 = vpack.c.bf16 %v181_v37, %v180_v36  ;;  %v183_v43 = vld [vmem:[#allocation5 + $0x68] sm:$0xff]  ;;  %v184_v47 = vld [vmem:[#allocation5 + $0x70] sm:$0xff] }
  0x41   :  { %v578_v44 = vpack.c.bf16 %v85_v40, %v84_v39  ;;  %v606_v45 = vpack.c.bf16 %v183_v43, %v182_v42  ;;  %v69_v46 = vld [vmem:[%s874_s0 + $0x8] sm:$0xff]  ;;  %v185_v48 = vld [vmem:[#allocation5 + $0x78] sm:$0xff]  ;;  %v270_v50 = vld [vmem:[#allocation7] sm:$0xff] }
  0x42   :  { %561 = vmatpush3.bf16.msra.mxu0 %v558_v8  ;;  %589 = vmatpush3.bf16.msra.mxu1 %v586_v17  ;;  %v610_v49 = vpack.c.bf16 %v185_v48, %v184_v47  ;;  %v271_v51 = vld [vmem:[#allocation7 + $0x8] sm:$0xff]  ;;  %v272_v52 = vld [vmem:[#allocation7 + $0x10] sm:$0xff]  ;;  %v273_v54 = vld [vmem:[#allocation7 + $0x18] sm:$0xff] }
  0x43   :  { %563 = vmatprep.subr.bf16.mxu0 %v562_v20  ;;  %591 = vmatprep.subr.bf16.mxu1 %v590_v23  ;;  %v614_v53 = vpack.c.bf16 %v271_v51, %v270_v50  ;;  %v618_v55 = vpack.c.bf16 %v273_v54, %v272_v52  ;;  %v274_v56 = vld [vmem:[#allocation7 + $0x20] sm:$0xff]  ;;  %v275_v57 = vld [vmem:[#allocation7 + $0x28] sm:$0xff]  ;;  %v276_v59 = vld [vmem:[#allocation7 + $0x30] sm:$0xff] }
  0x44   :  { %v622_v58 = vpack.c.bf16 %v275_v57, %v274_v56  ;;  %v277_v60 = vld [vmem:[#allocation7 + $0x38] sm:$0xff]  ;;  %v278_v62 = vld [vmem:[#allocation7 + $0x40] sm:$0xff]  ;;  %v279_v63 = vld [vmem:[#allocation7 + $0x48] sm:$0xff] }
  0x45   :  { %v626_v61 = vpack.c.bf16 %v277_v60, %v276_v59  ;;  %v630_v0 = vpack.c.bf16 %v279_v63, %v278_v62  ;;  %v280_v1 = vld [vmem:[#allocation7 + $0x50] sm:$0xff]  ;;  %v281_v2 = vld [vmem:[#allocation7 + $0x58] sm:$0xff]  ;;  %v282_v4 = vld [vmem:[#allocation7 + $0x60] sm:$0xff] }
  0x46   :  { %565 = vmatpush3.bf16.msra.mxu0 %v562_v20  ;;  %593 = vmatpush3.bf16.msra.mxu1 %v590_v23  ;;  %v634_v3 = vpack.c.bf16 %v281_v2, %v280_v1  ;;  %v283_v5 = vld [vmem:[#allocation7 + $0x68] sm:$0xff]  ;;  %v388_v7 = vld [vmem:[%s876_s2] ss:$0 sm:$0xff]  ;;  %v284_v14 = vld [vmem:[#allocation7 + $0x70] sm:$0xff] }
  0x47   :  { %567 = vmatprep.subr.bf16.mxu0 %v566_v26  ;;  %595 = vmatprep.subr.bf16.mxu1 %v594_v29  ;;  %v638_v6 = vpack.c.bf16 %v283_v5, %v282_v4  ;;  %v285_v15 = vld [vmem:[#allocation7 + $0x78] sm:$0xff]  ;;  %v389_v17 = vld [vmem:[%s878_s4] ss:$0 sm:$0xff]  ;;  %s718_s4 = scalar_lea.vmem %s376_s24, 256 }
  0x48   :  { %v642_v16 = vpack.c.bf16 %v285_v15, %v284_v14  ;;  %v390_v24 = vld [vmem:[%s880_s6] ss:$0 sm:$0xff]  ;;  %p719_p10 = scmp.ne.s32.totalorder %s376_s24, %s718_s4  ;;  %p724_p12 = scmp.lt.s32.totalorder %s718_s4, %s718_s4 }
  0x4a   :  { %569 = vmatpush3.bf16.msra.mxu0 %v566_v26  ;;  %597 = vmatpush3.bf16.msra.mxu1 %v594_v29  ;;  %p725_p13 = por %p724_p12, %p723_p11 }
  0x4b   :  { %571 = vmatprep.subr.bf16.mxu0 %v570_v32  ;;  %599 = vmatprep.subr.bf16.mxu1 %v598_v35 }
  0x4c   :  { %p726_p0 = pnand %p725_p13, %p719_p10 }
  0x4e   :  { %573 = vmatpush3.bf16.msra.mxu0 %v570_v32  ;;  %601 = vmatpush3.bf16.msra.mxu1 %v598_v35 }
  0x4f   :  { %575 = vmatprep.subr.bf16.mxu0 %v574_v38  ;;  %603 = vmatprep.subr.bf16.mxu1 %v602_v41 }
  0x52   :  { %577 = vmatpush3.bf16.msra.mxu0 %v574_v38  ;;  %605 = vmatpush3.bf16.msra.mxu1 %v602_v41 }
  0x53   :  { %579 = vmatprep.subr.bf16.mxu0 %v578_v44  ;;  %607 = vmatprep.subr.bf16.mxu1 %v606_v45 }
  0x56   :  { %581 = vmatpush3.bf16.msra.mxu0 %v578_v44  ;;  %609 = vmatpush3.bf16.msra.mxu1 %v606_v45 }
  0x57   :  { %611 = vmatprep.subr.bf16.mxu1 %v610_v49  ;;  %615 = vmatprep.subr.bf16.mxu0 %v614_v53 }
  0x59   :  { %478 = vmatmul.mubr.f32.vlgmr.msra.gmra.mrb[0].mxu0 %v69_v46 }
  0x5a   :  { %613 = vmatpush3.bf16.msra.mxu1 %v610_v49  ;;  %617 = vmatpush3.bf16.msra.mxu0 %v614_v53 }
  0x5b   :  { %619 = vmatprep.subr.bf16.mxu0 %v618_v55 }
  0x5e   :  { %621 = vmatpush3.bf16.msra.mxu0 %v618_v55 }
  0x5f   :  { %623 = vmatprep.subr.bf16.mxu0 %v622_v58 }
  0x62   :  { %625 = vmatpush3.bf16.msra.mxu0 %v622_v58 }
  0x63   :  { %627 = vmatprep.subr.bf16.mxu0 %v626_v61 }
  0x66   :  { %629 = vmatpush3.bf16.msra.mxu0 %v626_v61 }
  0x67   :  { %631 = vmatprep.subr.bf16.mxu0 %v630_v0 }
  0x6a   :  { %633 = vmatpush3.bf16.msra.mxu0 %v630_v0 }
  0x6b   :  { %635 = vmatprep.subr.bf16.mxu0 %v634_v3 }
  0x6e   :  { %637 = vmatpush3.bf16.msra.mxu0 %v634_v3 }
  0x6f   :  { %639 = vmatprep.subr.bf16.mxu0 %v638_v6 }
  0x72   :  { %641 = vmatpush3.bf16.msra.mxu0 %v638_v6 }
  0x73   :  { %643 = vmatprep.subr.bf16.mxu0 %v642_v16 }
  0x76   :  { %645 = vmatpush3.bf16.msra.mxu0 %v642_v16 }
 0x12c   :  { %v479_v8 = vpop.f32.mrb[0].mxu0 }
 0x12d   :  { %v165_v9 = vadd.f32 %v479_v8, %v388_v7  ;;  %v159_v10 = vpop.f32.mrb[1].mxu0 }
 0x12e   :  { %v160_v11 = vadd.f32 %v388_v7, %v159_v10 }
 0x12f   :  { %v169_v13 = vmax.f32 %v165_v9, 0.0 }
 0x130   :  { %v168_v12 = vmax.f32 %v160_v11, 0.0 }
 0x132   :  { %512 = vmatprep.mubr.f32.mxu1 %v168_v12 }
 0x133   :  { %513 = vmatmul.mubr.f32.vlgmr.msra.gmra.mrb[0].mxu1 %v169_v13 }
 0x206   :  { %v514_v18 = vpop.f32.mrb[0].mxu1 }
 0x207   :  { %v265_v19 = vadd.f32 %v514_v18, %v389_v17  ;;  %v259_v20 = vpop.f32.mrb[1].mxu1 }
 0x208   :  { %v260_v21 = vadd.f32 %v389_v17, %v259_v20 }
 0x209   :  { %v269_v23 = vmax.f32 %v265_v19, 0.0 }
 0x20a   :  { %v268_v22 = vmax.f32 %v260_v21, 0.0 }
 0x20c   :  { %547 = vmatprep.mubr.f32.mxu0 %v268_v22 }
 0x20d   :  { %548 = vmatmul.mubr.f32.vlgmr.msra.gmra.mrb[2].mxu0 %v269_v23 }
 0x2e0   :  { %v549_v25 = vpop.f32.mrb[2].mxu0 }
 0x2e1   :  { %v365_v26 = vadd.f32 %v549_v25, %v390_v24  ;;  %v359_v27 = vpop.f32.mrb[3].mxu0 }
 0x2e2   :  { %v360_v28 = vadd.f32 %v390_v24, %v359_v27 }
 0x2e3   :  { %369 = vst [vmem:[#allocation8 + $0x8] sm:$0xff] %v365_v26 }
 0x2e4   :  { %368 = vst [vmem:[#allocation8] sm:$0xff] %v360_v28 }
 0x2e5   :  { %729 = shalt.err (!%p726_p0)
}
 0x2e6   :  { %s730_s6 = scalar_lea.hbm %s881_s7, 256 }
 0x2e7   :  { %p731_p1 = scmp.ne.s32.totalorder %s881_s7, %s730_s6  ;;  %p734_p2 = scmp.lt.u32.totalorder %s730_s6, %s881_s7 }
 0x2e9   :  { %p736_p3 = pnand %p734_p2, %p731_p1 }
 0x2eb   :  { %739 = shalt.err (!%p736_p3)
}
 0x2ec   :  { %381 = dma.vmem_to_hbm [thread:$0]  %s376_s24, 256, %s881_s7, [#allocation4], %s748_s13, %s748_s13, %s749_s14  }
 0x2ed   :  { %744 = dma.done.wait [#allocation4], 256  }
 0x2ee   :  { %745 = vsyncadd [#allocation4], 4294967040 }
 0x2ef   :  { %385 = vsyncpa [#allocation3], 1 }
 0x2f0   :  { %386 = vsyncpa [#allocation6], 1 }
 0x2f1   :  { %387 = vsyncpa [#allocation4], 1 }

</bundles_post_ra>
